<compile_context>
chip_gen: v6e
topology: v6e:2x2x1
jax: 0.10.0
libtpu: 0.0.40
codegen_flags: <defaults>
</compile_context>

<pallas_src>
import jax
import jax.numpy as jnp
from jax.experimental import pallas as pl
from jax.experimental.pallas import tpu as pltpu

K = 8                            # particle / pad dimension of the trace
PLATE_A = 3                      # size of plate 'plate_a'  (m_c has shape (3,))
N_SITES = 1 + 1 + PLATE_A        # a, b, c[0..2]
ROWS = N_SITES * K               # 40 sublanes: rows 0..7 = a, 8..15 = b, 16..39 = c
LANES = 128                      # lane granularity (traces per vreg row)
TB_MAX = 512                     # max traces (lanes) per grid step

_HALF_LOG_2PI = 0.5 * float(jnp.log(2.0 * jnp.pi))


def _round_up(x, m):
    return ((x + m - 1) // m) * m


def q_kernel(mean_ref, eps_ref, samples_ref, logp_ref):
    """samples = mean + eps ; logp = Normal(mean,1).log_prob(sample).

    Layout: rows = (site, particle) pairs, lanes = traces (one trace/column).
    mean_ref is a grid-invariant (ROWS, TB) slab (constant index_map).
    """
    eps = eps_ref[...]
    samples_ref[...] = mean_ref[...] + eps
    logp_ref[...] = eps * eps * (-0.5) - _HALF_LOG_2PI


@jax.jit
def q_forward(m_a, m_b, m_c, eps):
    """Run the three Normal(mean, 1) sites for `num_traces` traces.

    Args:
      m_a: scalar, m_b: scalar, m_c: (3,) -- the module parameters.
      eps: (ROWS, num_traces) standard-normal noise (reparameterization).

    Returns:
      samples, logp : both (ROWS, num_traces) f32, one trace per column.
    """
    num_traces = eps.shape[1]

    # Lane-dense tiling over traces.
    tb = min(TB_MAX, _round_up(num_traces, LANES))
    b_pad = _round_up(num_traces, tb)
    grid = (b_pad // tb,)

    # Per-row mean: rows 0..K-1 -> a, K..2K-1 -> b, 2K + j*K + k -> c[j].
    row_means = jnp.concatenate([
        jnp.broadcast_to(m_a.astype(jnp.float32), (K,)),
        jnp.broadcast_to(m_b.astype(jnp.float32), (K,)),
        jnp.broadcast_to(m_c.astype(jnp.float32)[:, None], (PLATE_A, K)).reshape(-1),
    ])                                                     # (ROWS,)
    mean_slab = jnp.broadcast_to(row_means[:, None], (ROWS, tb))

    eps_pad = jnp.pad(eps.astype(jnp.float32),
                      ((0, 0), (0, b_pad - num_traces)))

    out_shape = jax.ShapeDtypeStruct((ROWS, b_pad), jnp.float32)
    samples, logp = pl.pallas_call(
        q_kernel,
        grid=grid,
        in_specs=[
            pl.BlockSpec((ROWS, tb), lambda b: (0, 0)),   # mean slab, resident
            pl.BlockSpec((ROWS, tb), lambda b: (0, b)),   # eps stream
        ],
        out_specs=(
            pl.BlockSpec((ROWS, tb), lambda b: (0, b)),
            pl.BlockSpec((ROWS, tb), lambda b: (0, b)),
        ),
        out_shape=(out_shape, out_shape),
        compiler_params=pltpu.CompilerParams(
            dimension_semantics=("parallel",)),
    )(mean_slab, eps_pad)

    return samples[:, :num_traces], logp[:, :num_traces]


def unpack_sites(packed):
    """(ROWS, B) slab -> per-site tensors a:(B,K), b:(B,K), c:(B,K,3)."""
    num_traces = packed.shape[1]
    a = packed[0:K].T
    b = packed[K:2 * K].T
    c = packed[2 * K:].reshape(PLATE_A, K, num_traces).transpose(2, 1, 0)
    return a, b, c


if __name__ == "__main__":
    B = 4  # small batch of traces for the demo

    # The module initializes its parameters to zero; use small random values
    # here so the mean-slab path is actually exercised.
    key = jax.random.PRNGKey(0)
    ka, kb, kc, ke = jax.random.split(key, 4)
    m_a = jax.random.normal(ka, (), jnp.float32)
    m_b = jax.random.normal(kb, (), jnp.float32)
    m_c = jax.random.normal(kc, (PLATE_A,), jnp.float32)
    eps = jax.random.normal(ke, (ROWS, B), jnp.float32)

    samples, logp = jax.block_until_ready(q_forward(m_a, m_b, m_c, eps))

    # ---- correctness checks ----------------------------------------------
    assert samples.shape == (ROWS, B) and logp.shape == (ROWS, B)
    assert bool(jnp.all(jnp.isfinite(samples))) and bool(jnp.all(jnp.isfinite(logp)))

    row_means = jnp.concatenate([
        jnp.broadcast_to(m_a, (K,)),
        jnp.broadcast_to(m_b, (K,)),
        jnp.broadcast_to(m_c[:, None], (PLATE_A, K)).reshape(-1),
    ])
    ref_samples = row_means[:, None] + eps
    ref_logp = -0.5 * eps * eps - _HALF_LOG_2PI
    assert jnp.allclose(samples, ref_samples, atol=1e-5, rtol=1e-5)
    assert jnp.allclose(logp, ref_logp, atol=1e-5, rtol=1e-5)

    # logp must equal Normal(mean, 1).log_prob(sample) for every entry.
    resid = samples - row_means[:, None]
    assert jnp.allclose(logp, -0.5 * resid * resid - _HALF_LOG_2PI,
                        atol=1e-5, rtol=1e-5)

    s_a, s_b, s_c = unpack_sites(samples)
    lp_a, lp_b, lp_c = unpack_sites(logp)
    assert s_a.shape == (B, K) and s_b.shape == (B, K) and s_c.shape == (B, K, PLATE_A)
    assert lp_a.shape == (B, K) and lp_b.shape == (B, K) and lp_c.shape == (B, K, PLATE_A)
    # Spot-check the c unpack against the packing convention.
    assert jnp.allclose(s_c[1, 2, 1], samples[2 * K + 1 * K + 2, 1])

    print("KERNEL_OK")
</pallas_src>

<mosaic_0001>
module attributes {stable_mosaic.version = 11 : i64} {
  func.func @q_kernel(%arg0: i32, %arg1: memref<40x128xf32, #tpu.memory_space<vmem>>, %arg2: memref<40x128xf32, #tpu.memory_space<vmem>>, %arg3: memref<40x128xf32, #tpu.memory_space<vmem>>, %arg4: memref<40x128xf32, #tpu.memory_space<vmem>>) attributes {dimension_semantics = [#tpu.dimension_semantics<parallel>], iteration_bounds = array<i64: 1>, scalar_prefetch = 0 : i64, scratch_operands = 0 : i64, tpu.core_type = #tpu.core_type<tc>, window_params = [{pipeline_mode = #tpu.pipeline_mode<synchronous>, transform_indices = @transform_0, window_bounds = array<i64: 40, 128>}, {transform_indices = @transform_1, window_bounds = array<i64: 40, 128>}, {transform_indices = @transform_2, window_bounds = array<i64: 40, 128>}, {transform_indices = @transform_3, window_bounds = array<i64: 40, 128>}]} {
    %c0 = arith.constant 0 : index
    %c0_0 = arith.constant 0 : index
    %0 = vector.load %arg2[%c0, %c0_0] : memref<40x128xf32, #tpu.memory_space<vmem>>, vector<40x128xf32>
    %c0_1 = arith.constant 0 : index
    %c0_2 = arith.constant 0 : index
    %1 = vector.load %arg1[%c0_1, %c0_2] : memref<40x128xf32, #tpu.memory_space<vmem>>, vector<40x128xf32>
    %2 = arith.addf %1, %0 : vector<40x128xf32>
    %c0_3 = arith.constant 0 : index
    %c0_4 = arith.constant 0 : index
    %3 = vector.load %arg3[%c0_3, %c0_4] : memref<40x128xf32, #tpu.memory_space<vmem>>, vector<40x128xf32>
    tpu.vector_store %arg3[%c0_3, %c0_4], %2 {strides = array<i32>} : memref<40x128xf32, #tpu.memory_space<vmem>>, vector<40x128xf32>,
    %4 = arith.mulf %0, %0 : vector<40x128xf32>
    %cst = arith.constant -5.000000e-01 : f32
    %5 = vector.broadcast %cst : f32 to vector<40x128xf32>
    %6 = arith.mulf %4, %5 : vector<40x128xf32>
    %cst_5 = arith.constant 0.918938517 : f32
    %7 = vector.broadcast %cst_5 : f32 to vector<40x128xf32>
    %8 = arith.subf %6, %7 : vector<40x128xf32>
    %c0_6 = arith.constant 0 : index
    %c0_7 = arith.constant 0 : index
    %9 = vector.load %arg4[%c0_6, %c0_7] : memref<40x128xf32, #tpu.memory_space<vmem>>, vector<40x128xf32>
    tpu.vector_store %arg4[%c0_6, %c0_7], %8 {strides = array<i32>} : memref<40x128xf32, #tpu.memory_space<vmem>>, vector<40x128xf32>,
    return
  }
  func.func @transform_0(%arg0: i32) -> (i32, i32) {
    %c0_i32 = arith.constant 0 : i32
    %c0_i32_0 = arith.constant 0 : i32
    %c0_i32_1 = arith.constant 0 : i32
    return %c0_i32, %c0_i32_0 : i32, i32
  }
  func.func @transform_1(%arg0: i32) -> (i32, i32) {
    %c0_i32 = arith.constant 0 : i32
    %c0_i32_0 = arith.constant 0 : i32
    return %c0_i32, %arg0 : i32, i32
  }
  func.func @transform_2(%arg0: i32) -> (i32, i32) {
    %c0_i32 = arith.constant 0 : i32
    %c0_i32_0 = arith.constant 0 : i32
    return %c0_i32, %arg0 : i32, i32
  }
  func.func @transform_3(%arg0: i32) -> (i32, i32) {
    %c0_i32 = arith.constant 0 : i32
    %c0_i32_0 = arith.constant 0 : i32
    return %c0_i32, %arg0 : i32, i32
  }
}

</mosaic_0001>

<bundles_post_ra>
// kernel: q_forward.1
= control target key start
LH: loop header
LB: loop body
LE: loop exit
PB: predicated region body
PF: predicated region fallthrough
CT: control target
= control target key end

     0   :  { %s146_s0 = inlined_call_operand.vmem [shape: f32[40,128], index: 0, kind: input, shape index: {}]   ;;  %s147_s1 = inlined_call_operand.vmem [shape: f32[40,128], index: 1, kind: input, shape index: {}]   ;;  %s148_s2 = inlined_call_operand.vmem [shape: f32[40,128], index: 2, kind: output, shape index: {0}]   ;;  %s149_s3 = inlined_call_operand.vmem [shape: f32[40,128], index: 3, kind: output, shape index: {1}]  }
   0x1   :  { %v13_v0 = vld [vmem:[%s147_s1] sm:$0xff]  ;;  %v14_v2 = vld [vmem:[%s147_s1 + $0x8] sm:$0xff]  ;;  %v15_v5 = vld [vmem:[%s147_s1 + $0x10] sm:$0xff] }
   0x2   :  { %v18_v1 = vld [vmem:[%s146_s0] sm:$0xff]  ;;  %v19_v4 = vld [vmem:[%s146_s0 + $0x8] sm:$0xff]  ;;  %v20_v6 = vld [vmem:[%s146_s0 + $0x10] sm:$0xff]  ;;  %v33_v7 = vmul.f32 %v13_v0, %v13_v0  ;;  %v34_v8 = vmul.f32 %v14_v2, %v14_v2  ;;  %v35_v14 = vmul.f32 %v15_v5, %v15_v5 }
   0x3   :  { %v23_v3 = vadd.f32 %v18_v1, %v13_v0  ;;  %v24_v9 = vadd.f32 %v19_v4, %v14_v2  ;;  %v25_v10 = vadd.f32 %v20_v6, %v15_v5  ;;  %v16_v11 = vld [vmem:[%s147_s1 + $0x18] sm:$0xff]  ;;  %v17_v13 = vld [vmem:[%s147_s1 + $0x20] sm:$0xff] }
   0x4   :  { %v21_v12 = vld [vmem:[%s146_s0 + $0x18] sm:$0xff]  ;;  %v22_v16 = vld [vmem:[%s146_s0 + $0x20] sm:$0xff]  ;;  %v38_v17 = vmul.f32 -0.5, %v33_v7  ;;  %v39_v18 = vmul.f32 -0.5, %v34_v8  ;;  %v36_v19 = vmul.f32 %v16_v11, %v16_v11  ;;  %v40_v21 = vmul.f32 -0.5, %v35_v14 }
   0x5   :  { %28 = vst [vmem:[%s148_s2] sm:$0xff] %v23_v3  ;;  %v26_v15 = vadd.f32 %v21_v12, %v16_v11  ;;  %29 = vst [vmem:[%s148_s2 + $0x8] sm:$0xff] %v24_v9  ;;  %v27_v20 = vadd.f32 %v22_v16, %v17_v13  ;;  %v37_v22 = vmul.f32 %v17_v13, %v17_v13 }
   0x6   :  { %30 = vst [vmem:[%s148_s2 + $0x10] sm:$0xff] %v25_v10  ;;  %v61_v23 = vadd.f32 -0.9189385, %v38_v17  ;;  %v62_v24 = vadd.f32 -0.9189385, %v39_v18  ;;  %v41_v25 = vmul.f32 -0.5, %v36_v19 }
   0x7   :  { %31 = vst [vmem:[%s148_s2 + $0x18] sm:$0xff] %v26_v15  ;;  %32 = vst [vmem:[%s148_s2 + $0x20] sm:$0xff] %v27_v20  ;;  %v63_v26 = vadd.f32 -0.9189385, %v40_v21  ;;  %v42_v27 = vmul.f32 -0.5, %v37_v22 }
   0x8   :  { %48 = vst [vmem:[%s149_s3] sm:$0xff] %v61_v23  ;;  %49 = vst [vmem:[%s149_s3 + $0x8] sm:$0xff] %v62_v24  ;;  %v64_v28 = vadd.f32 -0.9189385, %v41_v25 }
   0x9   :  { %50 = vst [vmem:[%s149_s3 + $0x10] sm:$0xff] %v63_v26  ;;  %v65_v29 = vadd.f32 -0.9189385, %v42_v27 }
   0xa   :  { %51 = vst [vmem:[%s149_s3 + $0x18] sm:$0xff] %v64_v28 }
   0xb   :  { %52 = vst [vmem:[%s149_s3 + $0x20] sm:$0xff] %v65_v29 }

</bundles_post_ra>
